<compile_context>
chip_gen: v7x
topology: tpu7x:2x2x1
jax: 0.10.0
libtpu: 0.0.40
codegen_flags: <defaults>
</compile_context>

<pallas_src>
import functools

import jax
import jax.numpy as jnp
from jax.experimental import pallas as pl
from jax.experimental.pallas import tpu as pltpu

LANE = 128              # TPU lane width
HIDDEN = 24
MAX_TILE = 2048         # max batch-tile rows (VMEM use stays < ~5 MiB)
MULTI_TC_BATCH = 512    # above this, force >=2 grid steps (v7x: 2 TensorCores)


def _round_up(n, m):
    return (n + m - 1) // m * m


def _cdiv(a, b):
    return -(-a // b)


def qnn_kernel(x_ref, w_ref, f_ref, o_ref, *, in_dim, bias_row):
    """Fused 3-layer MLP on one batch tile.

    x_ref : [TB, in_dim]        f32   raw features (no lane padding)
    w_ref : [256, 128]          bf16  rows [0:128)=W2, [128:256)=W3 (zero-padded)
    f_ref : [bias_row+8, 128]   f32   rows [0:in_dim)=W1; rows bias_row..+2 = b1,b2,b3
    o_ref : [TB, output_dim]    f32   Q-values (narrow, full-dim last axis)
    """
    x = x_ref[...]                                       # [TB, in_dim] f32

    # ---- Layer 1 on the VPU: K = in_dim broadcast FMAs (f32) ----------------
    acc = x[:, 0:1] * f_ref[0:1, :]                      # [TB, 128]
    for k in range(1, in_dim):                           # unrolled (static)
        acc = acc + x[:, k:k + 1] * f_ref[k:k + 1, :]
    h1 = jnp.maximum(acc + f_ref[bias_row:bias_row + 1, :], 0.0)
    h1 = h1.astype(jnp.bfloat16)

    # ---- Layer 2: MXU, bf16 operands, f32 accumulate -------------------------
    w2 = w_ref[0:LANE, :]
    h2 = jnp.dot(h1, w2, preferred_element_type=jnp.float32)
    h2 = jnp.maximum(h2 + f_ref[bias_row + 1:bias_row + 2, :], 0.0)
    h2 = h2.astype(jnp.bfloat16)

    # ---- Layer 3: MXU, no activation -----------------------------------------
    w3 = w_ref[LANE:2 * LANE, :]
    q = jnp.dot(h2, w3, preferred_element_type=jnp.float32)
    q = q + f_ref[bias_row + 2:bias_row + 3, :]

    # Narrow store of the meaningful Q-value columns only.
    o_ref[...] = q[:, 0:o_ref.shape[1]].astype(o_ref.dtype)


def pack_qnn_params(params):
    """Pack the 6 tiny parameter arrays into 2 resident slabs.

    Do this ONCE per weight update and cache the result — not per forward call.
    """
    w1, w2, w3 = params["w1"], params["w2"], params["w3"]
    b1, b2, b3 = params["b1"], params["b2"], params["b3"]
    in_dim, hidden = w1.shape
    out_dim = w3.shape[1]
    assert hidden <= LANE and out_dim <= LANE and in_dim <= LANE

    # bf16 MXU slab for layers 2 & 3 (each zero-padded to 128x128).
    w_slab = jnp.zeros((2 * LANE, LANE), jnp.float32)
    w_slab = w_slab.at[0:hidden, 0:hidden].set(w2)
    w_slab = w_slab.at[LANE:LANE + hidden, 0:out_dim].set(w3)

    # f32 slab: rows [0, in_dim) = W1 (used on the VPU), then b1, b2, b3.
    bias_row = _round_up(max(in_dim, 1), 8)
    f_slab = jnp.zeros((bias_row + 8, LANE), jnp.float32)
    f_slab = f_slab.at[0:in_dim, 0:hidden].set(w1)
    f_slab = f_slab.at[bias_row, 0:hidden].set(b1.reshape(-1))
    f_slab = f_slab.at[bias_row + 1, 0:hidden].set(b2.reshape(-1))
    f_slab = f_slab.at[bias_row + 2, 0:out_dim].set(b3.reshape(-1))

    return w_slab.astype(jnp.bfloat16), f_slab


@functools.partial(jax.jit, static_argnames=("output_dim",))
def qnn_forward_packed(x, w_slab, f_slab, output_dim):
    """x: [B, input_dim] f32.  Returns Q-values [B, output_dim] f32."""
    batch, in_dim = x.shape
    bias_row = f_slab.shape[0] - 8

    # Batch tile sized from the actual batch (minimal padding). For large
    # batches keep at least 2 grid steps so the "parallel" batch axis gets
    # sharded across v7x's two TensorCores.
    n_tiles = max(1, _cdiv(batch, MAX_TILE))
    if batch >= MULTI_TC_BATCH:
        n_tiles = max(n_tiles, 2)
    tb = _round_up(_cdiv(batch, n_tiles), 8)
    b_pad = _round_up(batch, tb)
    grid = b_pad // tb

    # Only pad the batch axis, and only when needed (B=8 path: no pad at all).
    x_p = x if b_pad == batch else jnp.pad(x, ((0, b_pad - batch), (0, 0)))

    kernel = functools.partial(qnn_kernel, in_dim=in_dim, bias_row=bias_row)
    out = pl.pallas_call(
        kernel,
        out_shape=jax.ShapeDtypeStruct((b_pad, output_dim), jnp.float32),
        grid=(grid,),
        in_specs=[
            pl.BlockSpec((tb, in_dim), lambda i: (i, 0)),        # x: streamed
            pl.BlockSpec((2 * LANE, LANE), lambda i: (0, 0)),    # W2|W3: resident
            pl.BlockSpec(f_slab.shape, lambda i: (0, 0)),        # W1+biases: resident
        ],
        out_specs=pl.BlockSpec((tb, output_dim), lambda i: (i, 0)),
        compiler_params=pltpu.CompilerParams(
            dimension_semantics=("parallel",),       # v7x: split batch grid over 2 TCs
            vmem_limit_bytes=16 * 1024 * 1024,
        ),
    )(x_p, w_slab, f_slab)

    return out if b_pad == batch else out[:batch]


def qnn_forward(x, params):
    """Convenience wrapper. Prefer pack_qnn_params() once + qnn_forward_packed()
    in a training/acting loop so the packing is not re-done every call."""
    w_slab, f_slab = pack_qnn_params(params)
    return qnn_forward_packed(x, w_slab, f_slab, params["w3"].shape[1])


def init_qnn_params(key, input_dim, output_dim, hidden=HIDDEN):
    """Matches the PyTorch module: weights kaiming_uniform_ (fan_in, a=0) ->
    U(+-sqrt(6/fan_in)); biases nn.Linear default -> U(+-1/sqrt(fan_in))."""
    dims = [(input_dim, hidden), (hidden, hidden), (hidden, output_dim)]
    params = {}
    keys = jax.random.split(key, 2 * len(dims))
    for i, (fan_in, fan_out) in enumerate(dims):
        wb = (6.0 / fan_in) ** 0.5
        bb = 1.0 / (fan_in ** 0.5)
        params[f"w{i+1}"] = jax.random.uniform(
            keys[2 * i], (fan_in, fan_out), jnp.float32, -wb, wb
        )
        params[f"b{i+1}"] = jax.random.uniform(
            keys[2 * i + 1], (1, fan_out), jnp.float32, -bb, bb
        )
    return params


if __name__ == "__main__":
    # CartPole: input_dim = 4 (state), output_dim = 2 (actions).
    input_dim, output_dim = 4, 2

    key = jax.random.PRNGKey(0)
    kx, kp, kx2 = jax.random.split(key, 3)
    params = init_qnn_params(kp, input_dim, output_dim)
    # Pack once (cache per weight update in a real training loop).
    w_slab, f_slab = pack_qnn_params(params)

    def ref_forward(x):
        # Reference matching the kernel's numerics: f32 layer 1, bf16 MXU
        # (f32 accumulation) for layers 2 & 3.
        h = jnp.dot(x, params["w1"], precision=jax.lax.Precision.HIGHEST)
        h = jnp.maximum(h + params["b1"], 0.0)
        h = jnp.dot(h.astype(jnp.bfloat16), params["w2"].astype(jnp.bfloat16),
                    preferred_element_type=jnp.float32) + params["b2"]
        h = jnp.maximum(h, 0.0)
        return jnp.dot(h.astype(jnp.bfloat16), params["w3"].astype(jnp.bfloat16),
                       preferred_element_type=jnp.float32) + params["b3"]

    # 1) Per-step action-selection batch: single grid step, no pad, no slice.
    x_small = jax.random.normal(kx, (8, input_dim), dtype=jnp.float32)
    q_small = qnn_forward_packed(x_small, w_slab, f_slab, output_dim)
    jax.block_until_ready(q_small)
    assert q_small.shape == (8, output_dim)
    assert jnp.allclose(q_small, ref_forward(x_small), atol=1e-2, rtol=1e-2)

    # 2) Replay-buffer-style batch (exercises the 2-tile parallel batch grid).
    x_big = jax.random.normal(kx2, (600, input_dim), dtype=jnp.float32)
    q_big = qnn_forward_packed(x_big, w_slab, f_slab, output_dim)
    jax.block_until_ready(q_big)
    assert q_big.shape == (600, output_dim)
    assert jnp.allclose(q_big, ref_forward(x_big), atol=1e-2, rtol=1e-2)

    print("KERNEL_OK")
</pallas_src>

<mosaic_0001>
module attributes {stable_mosaic.version = 11 : i64} {
  func.func @qnn_kernel(%arg0: i32, %arg1: memref<8x4xf32, #tpu.memory_space<vmem>>, %arg2: memref<256x128xbf16, #tpu.memory_space<vmem>>, %arg3: memref<16x128xf32, #tpu.memory_space<vmem>>, %arg4: memref<8x2xf32, #tpu.memory_space<vmem>>) attributes {dimension_semantics = [#tpu.dimension_semantics<parallel>], iteration_bounds = array<i64: 1>, scalar_prefetch = 0 : i64, scratch_operands = 0 : i64, tpu.core_type = #tpu.core_type<tc>, window_params = [{transform_indices = @transform_0, window_bounds = array<i64: 8, 4>}, {pipeline_mode = #tpu.pipeline_mode<synchronous>, transform_indices = @transform_1, window_bounds = array<i64: 256, 128>}, {pipeline_mode = #tpu.pipeline_mode<synchronous>, transform_indices = @transform_2, window_bounds = array<i64: 16, 128>}, {transform_indices = @transform_3, window_bounds = array<i64: 8, 2>}]} {
    %c0 = arith.constant 0 : index
    %c0_0 = arith.constant 0 : index
    %0 = vector.load %arg1[%c0, %c0_0] : memref<8x4xf32, #tpu.memory_space<vmem>>, vector<8x4xf32>
    %1 = vector.extract_strided_slice %0 {offsets = [0, 0], sizes = [8, 1], strides = [1, 1]} : vector<8x4xf32> to vector<8x1xf32>
    %c0_1 = arith.constant 0 : index
    %c0_2 = arith.constant 0 : index
    %2 = vector.load %arg3[%c0_1, %c0_2] : memref<16x128xf32, #tpu.memory_space<vmem>>, vector<1x128xf32>
    %3 = vector.broadcast %1 : vector<8x1xf32> to vector<8x128xf32>
    %4 = vector.broadcast %2 : vector<1x128xf32> to vector<8x128xf32>
    %5 = arith.mulf %3, %4 : vector<8x128xf32>
    %6 = vector.extract_strided_slice %0 {offsets = [0, 1], sizes = [8, 1], strides = [1, 1]} : vector<8x4xf32> to vector<8x1xf32>
    %c1 = arith.constant 1 : index
    %c0_3 = arith.constant 0 : index
    %7 = vector.load %arg3[%c1, %c0_3] : memref<16x128xf32, #tpu.memory_space<vmem>>, vector<1x128xf32>
    %8 = vector.broadcast %6 : vector<8x1xf32> to vector<8x128xf32>
    %9 = vector.broadcast %7 : vector<1x128xf32> to vector<8x128xf32>
    %10 = arith.mulf %8, %9 : vector<8x128xf32>
    %11 = arith.addf %5, %10 : vector<8x128xf32>
    %12 = vector.extract_strided_slice %0 {offsets = [0, 2], sizes = [8, 1], strides = [1, 1]} : vector<8x4xf32> to vector<8x1xf32>
    %c2 = arith.constant 2 : index
    %c0_4 = arith.constant 0 : index
    %13 = vector.load %arg3[%c2, %c0_4] : memref<16x128xf32, #tpu.memory_space<vmem>>, vector<1x128xf32>
    %14 = vector.broadcast %12 : vector<8x1xf32> to vector<8x128xf32>
    %15 = vector.broadcast %13 : vector<1x128xf32> to vector<8x128xf32>
    %16 = arith.mulf %14, %15 : vector<8x128xf32>
    %17 = arith.addf %11, %16 : vector<8x128xf32>
    %18 = vector.extract_strided_slice %0 {offsets = [0, 3], sizes = [8, 1], strides = [1, 1]} : vector<8x4xf32> to vector<8x1xf32>
    %c3 = arith.constant 3 : index
    %c0_5 = arith.constant 0 : index
    %19 = vector.load %arg3[%c3, %c0_5] : memref<16x128xf32, #tpu.memory_space<vmem>>, vector<1x128xf32>
    %20 = vector.broadcast %18 : vector<8x1xf32> to vector<8x128xf32>
    %21 = vector.broadcast %19 : vector<1x128xf32> to vector<8x128xf32>
    %22 = arith.mulf %20, %21 : vector<8x128xf32>
    %23 = arith.addf %17, %22 : vector<8x128xf32>
    %c8 = arith.constant 8 : index
    %c0_6 = arith.constant 0 : index
    %24 = vector.load %arg3[%c8, %c0_6] : memref<16x128xf32, #tpu.memory_space<vmem>>, vector<1x128xf32>
    %25 = vector.broadcast %24 : vector<1x128xf32> to vector<8x128xf32>
    %26 = arith.addf %23, %25 : vector<8x128xf32>
    %cst = arith.constant 0.000000e+00 : f32
    %27 = vector.broadcast %cst : f32 to vector<8x128xf32>
    %28 = arith.maximumf %26, %27 : vector<8x128xf32>
    %29 = arith.truncf %28 : vector<8x128xf32> to vector<8x128xbf16>
    %c0_7 = arith.constant 0 : index
    %c0_8 = arith.constant 0 : index
    %30 = vector.load %arg2[%c0_7, %c0_8] : memref<256x128xbf16, #tpu.memory_space<vmem>>, vector<128x128xbf16>
    %cst_9 = arith.constant dense<0.000000e+00> : vector<8x128xf32>
    %31 = tpu.matmul %29, %30, %cst_9 {dimension_numbers = #tpu.dot_dimension_numbers<[1], [0], [0], [1], [0, 0, 1, 1], [], []>} : vector<8x128xbf16>, vector<128x128xbf16>, vector<8x128xf32> -> vector<8x128xf32>
    %c9 = arith.constant 9 : index
    %c0_10 = arith.constant 0 : index
    %32 = vector.load %arg3[%c9, %c0_10] : memref<16x128xf32, #tpu.memory_space<vmem>>, vector<1x128xf32>
    %33 = vector.broadcast %32 : vector<1x128xf32> to vector<8x128xf32>
    %34 = arith.addf %31, %33 : vector<8x128xf32>
    %cst_11 = arith.constant 0.000000e+00 : f32
    %35 = vector.broadcast %cst_11 : f32 to vector<8x128xf32>
    %36 = arith.maximumf %34, %35 : vector<8x128xf32>
    %37 = arith.truncf %36 : vector<8x128xf32> to vector<8x128xbf16>
    %c128 = arith.constant 128 : index
    %c0_12 = arith.constant 0 : index
    %38 = vector.load %arg2[%c128, %c0_12] : memref<256x128xbf16, #tpu.memory_space<vmem>>, vector<128x128xbf16>
    %cst_13 = arith.constant dense<0.000000e+00> : vector<8x128xf32>
    %39 = tpu.matmul %37, %38, %cst_13 {dimension_numbers = #tpu.dot_dimension_numbers<[1], [0], [0], [1], [0, 0, 1, 1], [], []>} : vector<8x128xbf16>, vector<128x128xbf16>, vector<8x128xf32> -> vector<8x128xf32>
    %c10 = arith.constant 10 : index
    %c0_14 = arith.constant 0 : index
    %40 = vector.load %arg3[%c10, %c0_14] : memref<16x128xf32, #tpu.memory_space<vmem>>, vector<1x128xf32>
    %41 = vector.broadcast %40 : vector<1x128xf32> to vector<8x128xf32>
    %42 = arith.addf %39, %41 : vector<8x128xf32>
    %43 = vector.extract_strided_slice %42 {offsets = [0, 0], sizes = [8, 2], strides = [1, 1]} : vector<8x128xf32> to vector<8x2xf32>
    %c0_15 = arith.constant 0 : index
    %c0_16 = arith.constant 0 : index
    %44 = vector.load %arg4[%c0_15, %c0_16] : memref<8x2xf32, #tpu.memory_space<vmem>>, vector<8x2xf32>
    tpu.vector_store %arg4[%c0_15, %c0_16], %43 {strides = array<i32>} : memref<8x2xf32, #tpu.memory_space<vmem>>, vector<8x2xf32>,
    return
  }
  func.func @transform_0(%arg0: i32) -> (i32, i32) {
    %c0_i32 = arith.constant 0 : i32
    %c0_i32_0 = arith.constant 0 : i32
    return %arg0, %c0_i32 : i32, i32
  }
  func.func @transform_1(%arg0: i32) -> (i32, i32) {
    %c0_i32 = arith.constant 0 : i32
    %c0_i32_0 = arith.constant 0 : i32
    %c0_i32_1 = arith.constant 0 : i32
    return %c0_i32, %c0_i32_0 : i32, i32
  }
  func.func @transform_2(%arg0: i32) -> (i32, i32) {
    %c0_i32 = arith.constant 0 : i32
    %c0_i32_0 = arith.constant 0 : i32
    %c0_i32_1 = arith.constant 0 : i32
    return %c0_i32, %c0_i32_0 : i32, i32
  }
  func.func @transform_3(%arg0: i32) -> (i32, i32) {
    %c0_i32 = arith.constant 0 : i32
    %c0_i32_0 = arith.constant 0 : i32
    return %arg0, %c0_i32 : i32, i32
  }
}

</mosaic_0001>

<bundles_post_ra>
// kernel: qnn_forward_packed.1
= control target key start
LH: loop header
LB: loop body
LE: loop exit
PB: predicated region body
PF: predicated region fallthrough
CT: control target
= control target key end

     0   :  { %8 = vsyncpa [#allocation3], 0  ;;  %s444_s12 = smov [#allocation2]   ;;  %s530_s0 = inlined_call_operand.vmem [shape: f32[8,4], index: 0, kind: input, shape index: {}]   ;;  %s531_s1 = inlined_call_operand.hbm [shape: bf16[256,128], index: 1, kind: input, shape index: {}]   ;;  %s532_s2 = inlined_call_operand.vmem [shape: f32[16,128], index: 2, kind: input, shape index: {}]   ;;  %s533_s3 = inlined_call_operand.vmem [shape: f32[8,2], index: 3, kind: output, shape index: {}]  }
   0x1   :  { %s16_s13 = sshll.u32 %s444_s12, 4  ;;  %s420_s16 = scalar_lea.hbm %s531_s1, 2048  ;;  %s17_s13 = int_to_ptr.vmem [resolvable:$true] %s16_s13 }
   0x2   :  { %p421_p0 = scmp.ne.s32.totalorder %s531_s1, %s420_s16  ;;  %p424_p1 = scmp.lt.u32.totalorder %s420_s16, %s531_s1 }
   0x4   :  { %p426_p2 = pnand %p424_p1, %p421_p0 }
   0x6   :  { %429 = shalt.err (!%p426_p2)
}
   0x7   :  { %s430_s21 = scalar_lea.vmem %s17_s13, 2048  ;;  %p435_p4 = scmp.lt.s32.totalorder %s17_s13, %s17_s13 }
   0x8   :  { %p431_p3 = scmp.ne.s32.totalorder %s17_s13, %s430_s21  ;;  %p436_p5 = scmp.lt.s32.totalorder %s430_s21, %s430_s21 }
   0xa   :  { %p437_p6 = por %p436_p5, %p435_p4 }
   0xc   :  { %p438_p7 = pnand %p437_p6, %p431_p3 }
   0xe   :  { %441 = shalt.err (!%p438_p7)
}
   0xf   :  { %s445_s22 = smov 64   ;;  %s446_s23 = smov 4  }
  0x10   :  { %22 = dma.hbm_to_vmem [thread:$0]  %s531_s1, 2048, %s17_s13, [#allocation3], %s445_s22, %s445_s22, %s446_s23  }
  0x11   :  { %442 = dma.done.wait [#allocation3], 2048  }
  0x12   :  { %443 = vsyncadd [#allocation3], 4294965248  ;;  %v447_v0 = vmov 0   ;;  %v448_v1 = vmov 2   ;;  %v449_v2 = vmov 0.0   ;;  %v29_v3 = vld [vmem:[%s530_s0] sm:$0xff] }
  0x13   :  { %399 = vset.pattern.permute.xlu0 %v447_v0  ;;  %401 = vset.pattern.permute.xlu1 %v448_v1  ;;  %v404_v4 = vld [vmem:[#allocation2] sm:$0xff]   ;;  %v405_v5 = vld [vmem:[#allocation2 + $0x8] sm:$0xff]   ;;  %v450_v6 = vmov 1   ;;  %v451_v7 = vmov 3   ;;  %v406_v8 = vld [vmem:[#allocation2 + $0x10] sm:$0xff]   ;;  %vm452_vm0 = vmmov 0  }
  0x14   :  { %350 = vmatprep.subr.bf16.mxu0 %v449_v2  ;;  %370 = vmatprep.subr.bf16.mxu1 %v449_v2  ;;  %v407_v9 = vld [vmem:[#allocation2 + $0x18] sm:$0xff]   ;;  %v408_v10 = vld [vmem:[#allocation2 + $0x20] sm:$0xff]   ;;  %v409_v11 = vld [vmem:[#allocation2 + $0x28] sm:$0xff]   ;;  %vm302_vm1 = vcmask 15360  }
  0x15   :  { %33 = vperm.xlu0 %399, %v29_v3   ;;  %54 = vperm.xlu1 %401, %v29_v3   ;;  %v412_v12 = vld [vmem:[#allocation2 + $0x40] sm:$0xff]   ;;  %v413_v13 = vld [vmem:[#allocation2 + $0x48] sm:$0xff]   ;;  %v410_v14 = vld [vmem:[#allocation2 + $0x30] sm:$0xff]  }
  0x16   :  { %351 = vmatpush3.bf16.msra.mxu0 %v404_v4  ;;  %366 = vmatprep.mubr.msk.bf16.mxu0 %vm452_vm0, %v449_v2  ;;  %v414_v15 = vld [vmem:[#allocation2 + $0x50] sm:$0xff]   ;;  %v411_v16 = vld [vmem:[#allocation2 + $0x38] sm:$0xff]   ;;  %v416_v18 = vld [vmem:[#allocation2 + $0x60] sm:$0xff]  }
  0x17   :  { %352 = vmatprep.subr.bf16.mxu0 %v449_v2  ;;  %386 = vmatprep.mubr.msk.bf16.mxu1 %vm452_vm0, %v449_v2  ;;  %v415_v17 = vld [vmem:[#allocation2 + $0x58] sm:$0xff]   ;;  %v417_v19 = vld [vmem:[#allocation2 + $0x68] sm:$0xff]   ;;  %v309_v22 = vld [vmem:[%s532_s2] ss:$0 sm:$0xff] }
  0x18   :  { %371 = vmatpush3.bf16.msra.mxu1 %v412_v12  ;;  %v310_v23 = vld [vmem:[%s532_s2 + $0x1] ss:$0 sm:$0xff]  ;;  %v311_v24 = vld [vmem:[%s532_s2 + $0x2] ss:$0 sm:$0xff]  ;;  %v312_v26 = vld [vmem:[%s532_s2 + $0x3] ss:$0 sm:$0xff] }
  0x19   :  { %400 = vset.pattern.permute.xlu0 %v450_v6  ;;  %402 = vset.pattern.permute.xlu1 %v451_v7  ;;  %v313_v34 = vld [vmem:[%s532_s2 + $0x8] ss:$0 sm:$0xff]  ;;  %v418_v39 = vld [vmem:[#allocation2 + $0x70] sm:$0xff]   ;;  %v314_v41 = vld [vmem:[%s532_s2 + $0x9] ss:$0 sm:$0xff] }
  0x1a   :  { %43 = vperm.xlu0 %400, %v29_v3   ;;  %65 = vperm.xlu1 %402, %v29_v3   ;;  %v419_v40 = vld [vmem:[#allocation2 + $0x78] sm:$0xff]  }
  0x1b   :  { %353 = vmatpush3.bf16.msra.mxu0 %v405_v5  ;;  %372 = vmatprep.subr.bf16.mxu1 %v449_v2  ;;  %v323_v49 = vld [vmem:[%s532_s2 + $0xa] ss:$0 sm:$0xff] }
  0x1c   :  { %354 = vmatprep.subr.bf16.mxu0 %v449_v2  ;;  %373 = vmatpush3.bf16.msra.mxu1 %v413_v13 }
  0x1d   :  { %374 = vmatprep.subr.bf16.mxu1 %v449_v2 }
  0x1e   :  { %403 = vset.pattern.permute.xlu0 %v451_v7 }
  0x1f   :  { %355 = vmatpush3.bf16.msra.mxu0 %v406_v8 }
  0x20   :  { %356 = vmatprep.subr.bf16.mxu0 %v449_v2  ;;  %375 = vmatpush3.bf16.msra.mxu1 %v414_v15 }
  0x21   :  { %376 = vmatprep.subr.bf16.mxu1 %v449_v2 }
  0x23   :  { %357 = vmatpush3.bf16.msra.mxu0 %v407_v9 }
  0x24   :  { %358 = vmatprep.subr.bf16.mxu0 %v449_v2  ;;  %377 = vmatpush3.bf16.msra.mxu1 %v415_v17 }
  0x25   :  { %378 = vmatprep.subr.bf16.mxu1 %v449_v2 }
  0x27   :  { %359 = vmatpush3.bf16.msra.mxu0 %v408_v10 }
  0x28   :  { %360 = vmatprep.subr.bf16.mxu0 %v449_v2  ;;  %379 = vmatpush3.bf16.msra.mxu1 %v416_v18 }
  0x29   :  { %380 = vmatprep.subr.bf16.mxu1 %v449_v2 }
  0x2b   :  { %361 = vmatpush3.bf16.msra.mxu0 %v409_v11 }
  0x2c   :  { %362 = vmatprep.subr.bf16.mxu0 %v449_v2  ;;  %381 = vmatpush3.bf16.msra.mxu1 %v417_v19 }
  0x2d   :  { %382 = vmatprep.subr.bf16.mxu1 %v449_v2 }
  0x2f   :  { %363 = vmatpush3.bf16.msra.mxu0 %v410_v14 }
  0x30   :  { %364 = vmatprep.subr.bf16.mxu0 %v449_v2  ;;  %383 = vmatpush3.bf16.msra.mxu1 %v418_v39 }
  0x31   :  { %384 = vmatprep.subr.bf16.mxu1 %v449_v2 }
  0x33   :  { %365 = vmatpush3.bf16.msra.mxu0 %v411_v16 }
  0x34   :  { %385 = vmatpush3.bf16.msra.mxu1 %v419_v40 }
  0x94   :  { %v34_v20 = vpop.permute.xlu0 %33  ;;  %v55_v21 = vpop.permute.xlu1 %54 }
  0x95   :  { %v40_v28 = vmul.f32 %v309_v22, %v34_v20  ;;  %v61_v30 = vmul.f32 %v311_v24, %v55_v21 }
  0x99   :  { %v44_v25 = vpop.permute.xlu0 %43  ;;  %v66_v27 = vpop.permute.xlu1 %65 }
  0x9a   :  { %v50_v29 = vmul.f32 %v310_v23, %v44_v25  ;;  %v72_v32 = vmul.f32 %v312_v26, %v66_v27 }
  0x9c   :  { %v51_v31 = vadd.f32 %v50_v29, %v40_v28 }
  0x9e   :  { %v62_v33 = vadd.f32 %v61_v30, %v51_v31 }
  0xa0   :  { %v73_v35 = vadd.f32 %v72_v32, %v62_v33 }
  0xa2   :  { %v79_v36 = vadd.f32 %v313_v34, %v73_v35 }
  0xa4   :  { %v80_v37 = vmax.f32 %v79_v36, 0.0 }
  0xa6   :  { %v81_v38 = vpack.c.bf16 %v80_v37, %v80_v37 }
  0xa8   :  { %367 = vmatmul.mubr.bf16.vlgmr.msra.gmra.mrb[0].mxu0 %v81_v38 }
 0x17b   :  { %v185_v42 = vpop.f32.mrb[0].mxu0 }
 0x17c   :  { %v186_v43 = vadd.f32 %v314_v41, %v185_v42  ;;  %v368_v44 = vpop.f32.mrb[1].mxu0 }
 0x17d   :  { %v188_v45 = vpop.f32.mrb[2].mxu0 }
 0x17e   :  { %v191_v46 = vmax.f32 %v186_v43, 0.0  ;;  %v369_v47 = vpop.f32.mrb[3].mxu0 }
 0x180   :  { %v192_v48 = vpack.c.bf16 %v191_v46, %v191_v46 }
 0x182   :  { %387 = vmatmul.mubr.bf16.vlgmr.msra.gmra.mrb[0].mxu1 %v192_v48 }
 0x255   :  { %v296_v50 = vpop.f32.mrb[0].mxu1 }
 0x256   :  { %v297_v51 = vadd.f32 %v323_v49, %v296_v50  ;;  %v388_v52 = vpop.f32.mrb[1].mxu1 }
 0x257   :  { %v299_v53 = vpop.f32.mrb[2].mxu1 }
 0x258   :  { %303 = vst.msk [vmem:[%s533_s3] sm:$0xff] %vm302_vm1, %v297_v51  ;;  %v389_v54 = vpop.f32.mrb[3].mxu1 }
 0x259   :  { %308 = vsyncpa [#allocation3], 1 }

</bundles_post_ra>
